<compile_context>
chip_gen: v5e
topology: v5e:2x2
jax: 0.10.0
libtpu: 0.0.40
codegen_flags: <defaults>
</compile_context>

<pallas_src>
import jax
import jax.numpy as jnp
from jax.experimental import pallas as pl
from jax.experimental.pallas import tpu as pltpu

IN_DIM = 100    # Linear1 in features
HID_DIM = 100   # Linear1 out features (== IN_DIM, required by the residual add)
OUT_DIM = 10    # Linear2 out features
PAD = 128       # lane-dense output width (never shrink below 128)
TB = 1024       # batch rows per grid step (review: 1024-2048 sweet spot)


def _round_up(n, m):
    return ((n + m - 1) // m) * m


def _mlp_residual_kernel(x_ref, w1_ref, b1_ref, w2_ref, b2_ref, o_ref):
    # x_ref: (tb, 100) f32; w1: (100, 100) f32; b1: (1, 100) f32;
    # w2: (100, 128) f32 (cols 10..127 zero); b2: (1, 128) f32; o: (tb, 128).
    x = x_ref[...]                                                  # residual source
    h = jnp.dot(x, w1_ref[...], preferred_element_type=jnp.float32) + b1_ref[...]
    h = jnp.maximum(h, 0.0) + x                                     # ReLU + residual (f32)
    y = jnp.dot(h, w2_ref[...], preferred_element_type=jnp.float32) + b2_ref[...]
    o_ref[...] = y.astype(o_ref.dtype)


def simple_module_forward(x, w1, b1, w2, b2, *, tb=TB, out_dtype=jnp.float32):
    """Forward pass of SimpleModule.

    x: (B, 100) f32.  Weights are stored (in, out), i.e. transposed relative to
    PyTorch's nn.Linear convention, so the kernel computes x @ W + b directly.
    w1: (100, 100), b1: (1, 100), w2: (100, 10), b2: (1, 10).
    """
    B, in_dim = x.shape
    assert in_dim == IN_DIM and w1.shape == (IN_DIM, HID_DIM)
    # The residual add (ReLU(x @ w1 + b1) + x) requires in_dim == hidden_dim.
    assert IN_DIM == HID_DIM, "residual add requires Linear1 in == out features"
    assert w2.shape == (HID_DIM, OUT_DIM) and b2.shape == (1, OUT_DIM)

    # Batch tiling: moderate batches run as a single grid step; large batches
    # are tiled at `tb` (>=1024) rows so the ~0.35us per-step overhead is hidden.
    tb_eff = min(tb, _round_up(B, 8))
    Bp = _round_up(B, tb_eff)
    # Only the batch dim is (rarely) padded; there is NO feature-dim pad of x.
    xp = x if Bp == B else jnp.pad(x, ((0, Bp - B), (0, 0)))

    # Pad only the tiny second-layer params to a lane-dense 128-wide output.
    # The zero columns contribute nothing and are sliced off below.
    w2p = jnp.zeros((HID_DIM, PAD), jnp.float32).at[:, :OUT_DIM].set(w2)
    b2p = jnp.zeros((1, PAD), jnp.float32).at[:, :OUT_DIM].set(b2)

    out_nbytes = jnp.dtype(out_dtype).itemsize
    # Double-buffered x/out tiles + (double-buffered but constant-index) params.
    vmem_est = (2 * tb_eff * IN_DIM * 4 + 2 * tb_eff * PAD * 4
                + 2 * 4 * (IN_DIM * HID_DIM + HID_DIM + HID_DIM * PAD + PAD))
    # Only bump the scoped-VMEM limit when the tile would exceed v5e's 16 MiB
    # default (v6e/v7x default to 32 MiB scoped; never triggered at TB<=2048).
    vmem_limit = None
    if vmem_est > 12 * 1024 * 1024:
        vmem_limit = min(vmem_est + (4 << 20), 48 << 20)

    vm = pltpu.MemorySpace.VMEM
    out_padded = pl.pallas_call(
        _mlp_residual_kernel,
        out_shape=jax.ShapeDtypeStruct((Bp, PAD), out_dtype),
        grid=(Bp // tb_eff,),
        in_specs=[
            pl.BlockSpec((tb_eff, IN_DIM), lambda i: (i, 0), memory_space=vm),   # x tile
            pl.BlockSpec((IN_DIM, HID_DIM), lambda i: (0, 0), memory_space=vm),  # w1 (resident)
            pl.BlockSpec((1, HID_DIM), lambda i: (0, 0), memory_space=vm),       # b1
            pl.BlockSpec((HID_DIM, PAD), lambda i: (0, 0), memory_space=vm),     # w2 (resident)
            pl.BlockSpec((1, PAD), lambda i: (0, 0), memory_space=vm),           # b2
        ],
        out_specs=pl.BlockSpec((tb_eff, PAD), lambda i: (i, 0), memory_space=vm),
        compiler_params=pltpu.CompilerParams(
            # Batch steps are independent -> "parallel" lets megacore shard them.
            # (On v7x, if xprof shows one TC idle, switch to pltpu.CORE_PARALLEL.)
            dimension_semantics=("parallel",),
            vmem_limit_bytes=vmem_limit),
        cost_estimate=pl.CostEstimate(
            flops=2 * Bp * (IN_DIM * HID_DIM + HID_DIM * PAD),
            transcendentals=0,
            # Bytes actually moved: unpadded x in, 128-wide padded output out,
            # plus the (f32) parameters read once.
            bytes_accessed=Bp * IN_DIM * 4 + Bp * PAD * out_nbytes
            + 4 * (IN_DIM * HID_DIM + HID_DIM) + 4 * (HID_DIM * PAD + PAD),
        ),
    )(xp, w1, b1, w2p, b2p)

    # Rows B..Bp and cols 10..127 are padding garbage; never consume out_padded
    # directly -- always slice.
    return out_padded[:B, :OUT_DIM]


def reference_forward(x, w1, b1, w2, b2):
    h = jnp.maximum(x @ w1 + b1, 0.0) + x
    return h @ w2 + b2


if __name__ == "__main__":
    key = jax.random.PRNGKey(0)
    k_x, k_w1, k_b1, k_w2, k_b2 = jax.random.split(key, 5)

    B = 8  # small batch -> single grid step
    x = jax.random.normal(k_x, (B, IN_DIM), dtype=jnp.float32)

    # Deterministic parameter init (uniform, roughly matching PyTorch's
    # fan_in scaling for nn.Linear).
    bound1 = 1.0 / (IN_DIM ** 0.5)
    w1 = jax.random.uniform(k_w1, (IN_DIM, HID_DIM), jnp.float32, -bound1, bound1)
    b1 = jax.random.uniform(k_b1, (1, HID_DIM), jnp.float32, -bound1, bound1)
    bound2 = 1.0 / (HID_DIM ** 0.5)
    w2 = jax.random.uniform(k_w2, (HID_DIM, OUT_DIM), jnp.float32, -bound2, bound2)
    b2 = jax.random.uniform(k_b2, (1, OUT_DIM), jnp.float32, -bound2, bound2)

    out = simple_module_forward(x, w1, b1, w2, b2)
    out = jax.block_until_ready(out)

    ref = reference_forward(x, w1, b1, w2, b2)
    assert out.shape == (B, OUT_DIM)
    max_err = float(jnp.max(jnp.abs(out - ref)))
    # f32 matmuls now -> far tighter than the old bf16 5e-2 tolerance; a small
    # margin is left for MXU multi-pass f32 rounding differences across chips.
    assert jnp.allclose(out, ref, atol=1e-2, rtol=1e-2), max_err

    print("KERNEL_OK")
</pallas_src>

<mosaic_0001>
module attributes {stable_mosaic.version = 11 : i64} {
  func.func @_mlp_residual_kernel(%arg0: i32, %arg1: memref<8x100xf32, #tpu.memory_space<vmem>>, %arg2: memref<100x100xf32, #tpu.memory_space<vmem>>, %arg3: memref<1x100xf32, #tpu.memory_space<vmem>>, %arg4: memref<100x128xf32, #tpu.memory_space<vmem>>, %arg5: memref<1x128xf32, #tpu.memory_space<vmem>>, %arg6: memref<8x128xf32, #tpu.memory_space<vmem>>) attributes {dimension_semantics = [#tpu.dimension_semantics<parallel>], iteration_bounds = array<i64: 1>, scalar_prefetch = 0 : i64, scratch_operands = 0 : i64, tpu.core_type = #tpu.core_type<tc>, window_params = [{transform_indices = @transform_0, window_bounds = array<i64: 8, 100>}, {pipeline_mode = #tpu.pipeline_mode<synchronous>, transform_indices = @transform_1, window_bounds = array<i64: 100, 100>}, {pipeline_mode = #tpu.pipeline_mode<synchronous>, transform_indices = @transform_2, window_bounds = array<i64: 1, 100>}, {pipeline_mode = #tpu.pipeline_mode<synchronous>, transform_indices = @transform_3, window_bounds = array<i64: 100, 128>}, {pipeline_mode = #tpu.pipeline_mode<synchronous>, transform_indices = @transform_4, window_bounds = array<i64: 1, 128>}, {transform_indices = @transform_5, window_bounds = array<i64: 8, 128>}]} {
    %c0 = arith.constant 0 : index
    %c0_0 = arith.constant 0 : index
    %0 = vector.load %arg1[%c0, %c0_0] : memref<8x100xf32, #tpu.memory_space<vmem>>, vector<8x100xf32>
    %c0_1 = arith.constant 0 : index
    %c0_2 = arith.constant 0 : index
    %1 = vector.load %arg2[%c0_1, %c0_2] : memref<100x100xf32, #tpu.memory_space<vmem>>, vector<100x100xf32>
    %cst = arith.constant dense<0.000000e+00> : vector<8x100xf32>
    %2 = tpu.matmul %0, %1, %cst {dimension_numbers = #tpu.dot_dimension_numbers<[1], [0], [0], [1], [0, 0, 1, 1], [], []>} : vector<8x100xf32>, vector<100x100xf32>, vector<8x100xf32> -> vector<8x100xf32>
    %c0_3 = arith.constant 0 : index
    %c0_4 = arith.constant 0 : index
    %3 = vector.load %arg3[%c0_3, %c0_4] : memref<1x100xf32, #tpu.memory_space<vmem>>, vector<1x100xf32>
    %4 = vector.broadcast %3 : vector<1x100xf32> to vector<8x100xf32>
    %5 = arith.addf %2, %4 : vector<8x100xf32>
    %cst_5 = arith.constant 0.000000e+00 : f32
    %6 = vector.broadcast %cst_5 : f32 to vector<8x100xf32>
    %7 = arith.maximumf %5, %6 : vector<8x100xf32>
    %8 = arith.addf %7, %0 : vector<8x100xf32>
    %c0_6 = arith.constant 0 : index
    %c0_7 = arith.constant 0 : index
    %9 = vector.load %arg4[%c0_6, %c0_7] : memref<100x128xf32, #tpu.memory_space<vmem>>, vector<100x128xf32>
    %cst_8 = arith.constant dense<0.000000e+00> : vector<8x128xf32>
    %10 = tpu.matmul %8, %9, %cst_8 {dimension_numbers = #tpu.dot_dimension_numbers<[1], [0], [0], [1], [0, 0, 1, 1], [], []>} : vector<8x100xf32>, vector<100x128xf32>, vector<8x128xf32> -> vector<8x128xf32>
    %c0_9 = arith.constant 0 : index
    %c0_10 = arith.constant 0 : index
    %11 = vector.load %arg5[%c0_9, %c0_10] : memref<1x128xf32, #tpu.memory_space<vmem>>, vector<1x128xf32>
    %12 = vector.broadcast %11 : vector<1x128xf32> to vector<8x128xf32>
    %13 = arith.addf %10, %12 : vector<8x128xf32>
    %c0_11 = arith.constant 0 : index
    %c0_12 = arith.constant 0 : index
    %14 = vector.load %arg6[%c0_11, %c0_12] : memref<8x128xf32, #tpu.memory_space<vmem>>, vector<8x128xf32>
    tpu.vector_store %arg6[%c0_11, %c0_12], %13 {strides = array<i32>} : memref<8x128xf32, #tpu.memory_space<vmem>>, vector<8x128xf32>,
    return
  }
  func.func @transform_0(%arg0: i32) -> (i32, i32) {
    %c0_i32 = arith.constant 0 : i32
    %c0_i32_0 = arith.constant 0 : i32
    return %arg0, %c0_i32 : i32, i32
  }
  func.func @transform_1(%arg0: i32) -> (i32, i32) {
    %c0_i32 = arith.constant 0 : i32
    %c0_i32_0 = arith.constant 0 : i32
    %c0_i32_1 = arith.constant 0 : i32
    return %c0_i32, %c0_i32_0 : i32, i32
  }
  func.func @transform_2(%arg0: i32) -> (i32, i32) {
    %c0_i32 = arith.constant 0 : i32
    %c0_i32_0 = arith.constant 0 : i32
    %c0_i32_1 = arith.constant 0 : i32
    return %c0_i32, %c0_i32_0 : i32, i32
  }
  func.func @transform_3(%arg0: i32) -> (i32, i32) {
    %c0_i32 = arith.constant 0 : i32
    %c0_i32_0 = arith.constant 0 : i32
    %c0_i32_1 = arith.constant 0 : i32
    return %c0_i32, %c0_i32_0 : i32, i32
  }
  func.func @transform_4(%arg0: i32) -> (i32, i32) {
    %c0_i32 = arith.constant 0 : i32
    %c0_i32_0 = arith.constant 0 : i32
    %c0_i32_1 = arith.constant 0 : i32
    return %c0_i32, %c0_i32_0 : i32, i32
  }
  func.func @transform_5(%arg0: i32) -> (i32, i32) {
    %c0_i32 = arith.constant 0 : i32
    %c0_i32_0 = arith.constant 0 : i32
    return %arg0, %c0_i32 : i32, i32
  }
}

</mosaic_0001>

<bundles_post_ra>
// kernel: tpu_custom_call.1
= control target key start
LH: loop header
LB: loop body
LE: loop exit
PB: predicated region body
PF: predicated region fallthrough
CT: control target
= control target key end

     0   :  { %10 = vsyncpa [#allocation3], 0  ;;  %s346_s0 = inlined_call_operand.hbm [shape: f32[8,100], index: 0, kind: input, shape index: {}]   ;;  %s347_s1 = inlined_call_operand.hbm [shape: f32[100,100], index: 1, kind: input, shape index: {}]   ;;  %s348_s2 = inlined_call_operand.vmem [shape: f32[1,100], index: 2, kind: input, shape index: {}]   ;;  %s349_s3 = inlined_call_operand.hbm [shape: f32[100,128], index: 3, kind: input, shape index: {}]   ;;  %s350_s4 = inlined_call_operand.vmem [shape: f32[1,128], index: 4, kind: input, shape index: {}]   ;;  %s351_s5 = inlined_call_operand.hbm [shape: f32[8,128], index: 5, kind: output, shape index: {}]  }
   0x1   :  { %11 = vsyncpa [#allocation6], 0  ;;  %s28_s20 = sshll.u32 %s347_s1, 4  ;;  %s29_s20 = int_to_ptr.hbm [resolvable:$true] %s28_s20 }
   0x2   :  { %12 = vsyncpa [#allocation4], 0  ;;  %s290_s21 = smov [#allocation5]   ;;  %s18_s25 = sshll.u32 %s346_s0, 4  ;;  %s19_s25 = int_to_ptr.hbm [resolvable:$true] %s18_s25 }
   0x3   :  { %s30_s22 = sshll.u32 %s290_s21, 4  ;;  %s291_s26 = smov 128   ;;  %s31_s22 = int_to_ptr.vmem [resolvable:$true] %s30_s22 }
   0x4   :  { %s292_s27 = smov 8   ;;  %s293_s28 = smov [#allocation2]  }
   0x5   :  { %36 = dma.hbm_to_vmem [thread:$0]  %s29_s20, 1664, %s31_s22, [#allocation6], %s291_s26, %s291_s26, %s292_s27  }
   0x6   :  { %s20_s29 = sshll.u32 %s293_s28, 4  ;;  %s43_s7 = sshll.u32 %s349_s3, 4  ;;  %s21_s29 = int_to_ptr.vmem [resolvable:$true] %s20_s29  ;;  %s44_s7 = int_to_ptr.hbm [resolvable:$true] %s43_s7 }
   0x7   :  { %23 = dma.hbm_to_vmem [thread:$0]  %s19_s25, 128, %s21_s29, [#allocation3]  }
   0x8   :  { %s294_s1 = smov [#allocation7]  }
   0x9   :  { %s45_s8 = sshll.u32 %s294_s1, 4  ;;  %s46_s8 = int_to_ptr.vmem [resolvable:$true] %s45_s8 }
   0xa   :  { %51 = dma.hbm_to_vmem [thread:$0]  %s44_s7, 1664, %s46_s8, [#allocation6], %s291_s26, %s291_s26, %s292_s27  }
   0xb   :  { %284 = dma.done.wait [#allocation3], 128  }
   0xc   :  { %285 = vsyncadd [#allocation3], 4294967168 }
   0xd   :  { %286 = dma.done.wait [#allocation6], 3328  }
   0xe   :  { %287 = vsyncadd [#allocation6], 4294963968  ;;  %vm88_vm0 = vcmask 1043456   ;;  %v79_v0 = vld [vmem:[#allocation5 + $0x60] sm:$0xf]  ;;  %v78_v1 = vld [vmem:[#allocation5 + $0x58] sm:$0xff] }
   0xf   :  { %176 = vmatpush.msk.msra.mxu0 %vm88_vm0, %v79_v0  ;;  %v77_v2 = vld [vmem:[#allocation5 + $0x50] sm:$0xff]  ;;  %v76_v3 = vld [vmem:[#allocation5 + $0x48] sm:$0xff]  ;;  %v125_v5 = vld [vmem:[#allocation7 + $0x58] sm:$0xff]  ;;  %vm84_vm1 = vcmask 818176   ;;  %s295_s11 = smov [#allocation8]   ;;  %s165_s15 = sshll.u32 %s351_s5, 4  ;;  %s166_s15 = int_to_ptr.hbm [resolvable:$true] %s165_s15 }
  0x10   :  { %v126_v4 = vld [vmem:[#allocation7 + $0x60] sm:$0xf]  ;;  %v75_v6 = vld [vmem:[#allocation5 + $0x40] sm:$0xff]  ;;  %v124_v7 = vld [vmem:[#allocation7 + $0x50] sm:$0xff]  ;;  %s163_s12 = sshll.u32 %s295_s11, 4  ;;  %s164_s12 = int_to_ptr.vmem [resolvable:$true] %s163_s12 }
  0x11   :  { %96 = vmatpush.msra.mxu0 %v78_v1  ;;  %178 = vmatpush.msk.msra.mxu1 %vm88_vm0, %v126_v4  ;;  %v74_v8 = vld [vmem:[#allocation5 + $0x38] sm:$0xff]  ;;  %v123_v9 = vld [vmem:[#allocation7 + $0x48] sm:$0xff]  ;;  %v122_v11 = vld [vmem:[#allocation7 + $0x40] sm:$0xff] }
  0x12   :  { %v73_v10 = vld [vmem:[#allocation5 + $0x30] sm:$0xff]  ;;  %v72_v12 = vld [vmem:[#allocation5 + $0x28] sm:$0xff]  ;;  %v121_v13 = vld [vmem:[#allocation7 + $0x38] sm:$0xff] }
  0x13   :  { %97 = vmatpush.msra.mxu0 %v77_v2  ;;  %141 = vmatpush.msra.mxu1 %v125_v5  ;;  %v71_v14 = vld [vmem:[#allocation5 + $0x20] sm:$0xff]  ;;  %v120_v15 = vld [vmem:[#allocation7 + $0x30] sm:$0xff]  ;;  %v119_v17 = vld [vmem:[#allocation7 + $0x28] sm:$0xff] }
  0x14   :  { %v70_v16 = vld [vmem:[#allocation5 + $0x18] sm:$0xff]  ;;  %v69_v18 = vld [vmem:[#allocation5 + $0x10] sm:$0xff]  ;;  %v118_v19 = vld [vmem:[#allocation7 + $0x20] sm:$0xff] }
  0x15   :  { %98 = vmatpush.msra.mxu0 %v76_v3  ;;  %142 = vmatpush.msra.mxu1 %v124_v7  ;;  %v68_v20 = vld [vmem:[#allocation5 + $0x8] sm:$0xff]  ;;  %v67_v21 = vld [vmem:[#allocation5] sm:$0xff]  ;;  %v66_v22 = vld [vmem:[#allocation2] sm:$0xff] }
  0x16   :  { %v117_v23 = vld [vmem:[#allocation7 + $0x18] sm:$0xff]  ;;  %v116_v24 = vld [vmem:[#allocation7 + $0x10] sm:$0xff]  ;;  %v115_v25 = vld [vmem:[#allocation7 + $0x8] sm:$0xff] }
  0x17   :  { %99 = vmatpush.msra.mxu0 %v75_v6  ;;  %143 = vmatpush.msra.mxu1 %v123_v9  ;;  %v114_v26 = vld [vmem:[#allocation7] sm:$0xff]  ;;  %v186_v27 = vld [vmem:[%s348_s2] ss:$0 sm:$0xff] }
  0x18   :  { %v187_v32 = vld [vmem:[%s350_s4] ss:$0 sm:$0xff] }
  0x19   :  { %100 = vmatpush.msra.mxu0 %v74_v8  ;;  %144 = vmatpush.msra.mxu1 %v122_v11 }
  0x1b   :  { %101 = vmatpush.msra.mxu0 %v73_v10  ;;  %145 = vmatpush.msra.mxu1 %v121_v13 }
  0x1d   :  { %102 = vmatpush.msra.mxu0 %v72_v12  ;;  %146 = vmatpush.msra.mxu1 %v120_v15 }
  0x1f   :  { %103 = vmatpush.msra.mxu0 %v71_v14  ;;  %147 = vmatpush.msra.mxu1 %v119_v17 }
  0x21   :  { %104 = vmatpush.msra.mxu0 %v70_v16  ;;  %148 = vmatpush.msra.mxu1 %v118_v19 }
  0x23   :  { %105 = vmatpush.msra.mxu0 %v69_v18  ;;  %149 = vmatpush.msra.mxu1 %v117_v23 }
  0x25   :  { %106 = vmatpush.msra.mxu0 %v68_v20  ;;  %150 = vmatpush.msra.mxu1 %v116_v24 }
  0x27   :  { %107 = vmatpush.msra.mxu0 %v67_v21  ;;  %151 = vmatpush.msra.mxu1 %v115_v25 }
  0x28   :  { %177 = vmatmul.msk.f32.vlgmr.msra.gmra.mxu0 %vm84_vm1, %v66_v22 }
  0x29   :  { %152 = vmatpush.msra.mxu1 %v114_v26 }
  0xa5   :  { %v109_v28 = vpop.f32.mrf.mxu0 }
  0xa6   :  { %v110_v29 = vadd.f32 %v186_v27, %v109_v28 }
  0xa8   :  { %v112_v30 = vmax.f32 %v110_v29, 0.0 }
  0xaa   :  { %v113_v31 = vadd.f32 %v112_v30, %v66_v22 }
  0xac   :  { %179 = vmatmul.msk.f32.vlgmr.msra.gmra.mxu1 %vm84_vm1, %v113_v31 }
 0x129   :  { %v154_v33 = vpop.f32.mrf.mxu1 }
 0x12a   :  { %v155_v34 = vadd.f32 %v187_v32, %v154_v33 }
 0x12c   :  { %157 = vst [vmem:[#allocation8] sm:$0xff] %v155_v34 }
 0x12d   :  { %168 = dma.vmem_to_hbm [thread:$0]  %s164_s12, 128, %s166_s15, [#allocation4]  }
 0x12e   :  { %288 = dma.done.wait [#allocation4], 128  }
 0x12f   :  { %289 = vsyncadd [#allocation4], 4294967168 }
 0x130   :  { %173 = vsyncpa [#allocation3], 1 }
 0x131   :  { %174 = vsyncpa [#allocation6], 1 }
 0x132   :  { %175 = vsyncpa [#allocation4], 1 }

</bundles_post_ra>
